<compile_context>
chip_gen: v6e
topology: v6e:2x2x1
jax: 0.10.0
libtpu: 0.0.40
codegen_flags: <defaults>
</compile_context>

<pallas_src>
import jax
import jax.numpy as jnp
from jax.experimental import pallas as pl
from jax.experimental.pallas import tpu as pltpu

BN_EPS = 1e-5


# ----------------------------------------------------------------------------
# Fused Pallas kernel: [conv3x3+BN+ReLU] x 2 on lane-dense (H, W*C) slabs
# ----------------------------------------------------------------------------
def _up_doubleconv_kernel(x2_ref, x1_ref, b1a_ref, b1b_ref, s1_ref, t1_ref,
                          b2_ref, s2_ref, t2_ref, o_ref,
                          pada_ref, padb_ref, padh_ref):
    # x2_ref : (1, H, W*C2)   skip connection, (w, c) interleaved on lanes
    # x1_ref : (1, H, W*C1)   upsampled + padded low-res features
    # b1a/b1b: (3, W*Cg, W*Co)  banded conv1 weights (x2-part / x1-part)
    # b2     : (3, W*Co, W*Co)  banded conv2 weights
    # s*/t*  : (1, W*Co)        folded BN scale / bias, tiled over w
    # o_ref  : (1, H, W*Co)
    # pad*   : VMEM scratch (H+2, W*C) -- zero-padded (halo) conv inputs
    H = o_ref.shape[1]
    WCo = o_ref.shape[2]

    # --- build zero-halo conv1 inputs in VMEM (no HBM pad round trip) ---
    pada_ref[...] = jnp.zeros_like(pada_ref)
    padb_ref[...] = jnp.zeros_like(padb_ref)
    pada_ref[1:H + 1, :] = x2_ref[0]
    padb_ref[1:H + 1, :] = x1_ref[0]

    # --- conv1 + BN + ReLU: 3 banded matmuls per input group ---
    acc1 = jnp.zeros((H, WCo), jnp.float32)
    for dy in range(3):
        acc1 += jnp.dot(pada_ref[dy:dy + H, :], b1a_ref[dy],
                        preferred_element_type=jnp.float32)
        acc1 += jnp.dot(padb_ref[dy:dy + H, :], b1b_ref[dy],
                        preferred_element_type=jnp.float32)
    h = jnp.maximum(acc1 * s1_ref[...] + t1_ref[...], 0.0)   # (H, W*Co)

    # --- conv2 + BN + ReLU: intermediate h stays in VMEM ---
    padh_ref[...] = jnp.zeros_like(padh_ref)
    padh_ref[1:H + 1, :] = h
    acc2 = jnp.zeros((H, WCo), jnp.float32)
    for dy in range(3):
        acc2 += jnp.dot(padh_ref[dy:dy + H, :], b2_ref[dy],
                        preferred_element_type=jnp.float32)
    y = jnp.maximum(acc2 * s2_ref[...] + t2_ref[...], 0.0)

    o_ref[...] = y[None].astype(o_ref.dtype)                 # lane-dense store


def _up_doubleconv_call(x2f, x1f, p):
    N, H, WC2 = x2f.shape
    WC1 = x1f.shape[2]
    WCo = p["b2"].shape[2]

    return pl.pallas_call(
        _up_doubleconv_kernel,
        out_shape=jax.ShapeDtypeStruct((N, H, WCo), x2f.dtype),
        grid=(N,),
        in_specs=[
            pl.BlockSpec((1, H, WC2), lambda n: (n, 0, 0)),
            pl.BlockSpec((1, H, WC1), lambda n: (n, 0, 0)),
            pl.BlockSpec(p["b1a"].shape, lambda n: (0, 0, 0)),
            pl.BlockSpec(p["b1b"].shape, lambda n: (0, 0, 0)),
            pl.BlockSpec((1, WCo), lambda n: (0, 0)),
            pl.BlockSpec((1, WCo), lambda n: (0, 0)),
            pl.BlockSpec(p["b2"].shape, lambda n: (0, 0, 0)),
            pl.BlockSpec((1, WCo), lambda n: (0, 0)),
            pl.BlockSpec((1, WCo), lambda n: (0, 0)),
        ],
        out_specs=pl.BlockSpec((1, H, WCo), lambda n: (n, 0, 0)),
        scratch_shapes=[
            pltpu.VMEM((H + 2, WC2), jnp.float32),
            pltpu.VMEM((H + 2, WC1), jnp.float32),
            pltpu.VMEM((H + 2, WCo), jnp.float32),
        ],
        compiler_params=pltpu.CompilerParams(
            dimension_semantics=("parallel",)),
    )(x2f, x1f, p["b1a"], p["b1b"], p["s1"], p["t1"],
      p["b2"], p["s2"], p["t2"])


# ----------------------------------------------------------------------------
# Plain-JAX glue: bilinear upsample x2 (align_corners=True)
# ----------------------------------------------------------------------------
def bilinear_upsample_x2_align_corners(x_nhwc):
    N, H, W, C = x_nhwc.shape
    Ho, Wo = 2 * H, 2 * W

    def coords(out_size, in_size):
        src = jnp.arange(out_size, dtype=jnp.float32) * (
            (in_size - 1) / (out_size - 1))
        i0 = jnp.clip(jnp.floor(src).astype(jnp.int32), 0, max(in_size - 2, 0))
        i1 = jnp.minimum(i0 + 1, in_size - 1)
        frac = src - i0.astype(jnp.float32)
        return frac, i0, i1

    fy, y0, y1 = coords(Ho, H)
    fx, x0, x1 = coords(Wo, W)

    top = x_nhwc[:, y0, :, :]
    bot = x_nhwc[:, y1, :, :]
    rows = top * (1.0 - fy)[None, :, None, None] + bot * fy[None, :, None, None]

    left = rows[:, :, x0, :]
    right = rows[:, :, x1, :]
    return (left * (1.0 - fx)[None, None, :, None]
            + right * fx[None, None, :, None])


# ----------------------------------------------------------------------------
# Parameter construction: PyTorch-layout weights -> banded matmul weights
# ----------------------------------------------------------------------------
def build_band(w_g, W):
    """w_g: (Cout, Cg, 3, 3) -> (3, W*Cg, W*Cout) banded matrices.

    B[dy, wi*Cg + ci, wo*Cout + co] = w_g[co, ci, dy, wi - wo + 1]
    for |wi - wo| <= 1 (the W-edge zero padding is absorbed by the band)."""
    Cout, Cg = w_g.shape[0], w_g.shape[1]
    wt = jnp.transpose(w_g, (2, 3, 1, 0))               # (dy, dx, ci, co)
    wi = jnp.arange(W)[:, None]
    wo = jnp.arange(W)[None, :]
    d = wi - wo + 1                                      # dx
    valid = ((d >= 0) & (d <= 2)).astype(w_g.dtype)      # (W, W)
    dc = jnp.clip(d, 0, 2)
    bands = []
    for dy in range(3):
        blk = wt[dy][dc] * valid[:, :, None, None]       # (wi, wo, ci, co)
        B = jnp.transpose(blk, (0, 2, 1, 3)).reshape(W * Cg, W * Cout)
        bands.append(B)
    return jnp.stack(bands, axis=0)


def _make_conv_bn_raw(key, in_c, out_c):
    kw, kb, kg, kbeta = jax.random.split(key, 4)
    w_pt = jax.random.normal(kw, (out_c, in_c, 3, 3), jnp.float32) * 0.1
    b = jax.random.normal(kb, (out_c,), jnp.float32) * 0.1
    gamma = 1.0 + 0.1 * jax.random.normal(kg, (out_c,), jnp.float32)
    beta = 0.1 * jax.random.normal(kbeta, (out_c,), jnp.float32)
    running_mean = jnp.zeros((out_c,), jnp.float32)
    running_var = jnp.ones((out_c,), jnp.float32)
    scale = gamma / jnp.sqrt(running_var + BN_EPS)       # folded BN scale
    bias = beta + scale * (b - running_mean)             # folded BN + conv bias
    return w_pt, scale, bias


def make_up_params(key, c2, c1, out_c, W):
    k1, k2 = jax.random.split(key)
    w1, s1, t1 = _make_conv_bn_raw(k1, c2 + c1, out_c)
    w2, s2, t2 = _make_conv_bn_raw(k2, out_c, out_c)

    kparams = {
        "b1a": build_band(w1[:, :c2], W),    # conv1, x2 channels (concat order)
        "b1b": build_band(w1[:, c2:], W),    # conv1, x1 channels
        "s1": jnp.tile(s1, W)[None, :],
        "t1": jnp.tile(t1, W)[None, :],
        "b2": build_band(w2, W),
        "s2": jnp.tile(s2, W)[None, :],
        "t2": jnp.tile(t2, W)[None, :],
    }
    raw = {"w1": w1, "s1v": s1, "t1v": t1, "w2": w2, "s2v": s2, "t2v": t2}
    return raw, kparams


# ----------------------------------------------------------------------------
# Up.forward
# ----------------------------------------------------------------------------
def up_forward(x1_nchw, x2_nchw, kparams):
    N, C1, _, _ = x1_nchw.shape
    _, C2, H, W = x2_nchw.shape

    # NCHW -> NHWC (channels minor)
    x1 = jnp.transpose(x1_nchw, (0, 2, 3, 1))
    x2 = jnp.transpose(x2_nchw, (0, 2, 3, 1))

    x1 = bilinear_upsample_x2_align_corners(x1)
    diffY = H - x1.shape[1]
    diffX = W - x1.shape[2]
    x1 = jnp.pad(x1, ((0, 0),
                      (diffY // 2, diffY - diffY // 2),
                      (diffX // 2, diffX - diffX // 2),
                      (0, 0)))

    # flatten (W, C) onto the lane axis -> lane-dense kernel I/O
    x2f = x2.reshape(N, H, W * C2)
    x1f = x1.reshape(N, H, W * C1)

    out_flat = _up_doubleconv_call(x2f, x1f, kparams)     # (N, H, W*Cout)
    Cout = out_flat.shape[2] // W
    out = out_flat.reshape(N, H, W, Cout)
    return jnp.transpose(out, (0, 3, 1, 2))               # NHWC -> NCHW


# ----------------------------------------------------------------------------
# Pure-JAX reference (same math, no Pallas) for a numerical sanity check
# ----------------------------------------------------------------------------
def reference_up_forward(x1_nchw, x2_nchw, raw):
    x1 = jnp.transpose(x1_nchw, (0, 2, 3, 1))
    x2 = jnp.transpose(x2_nchw, (0, 2, 3, 1))
    x1 = bilinear_upsample_x2_align_corners(x1)
    diffY = x2.shape[1] - x1.shape[1]
    diffX = x2.shape[2] - x1.shape[2]
    x1 = jnp.pad(x1, ((0, 0),
                      (diffY // 2, diffY - diffY // 2),
                      (diffX // 2, diffX - diffX // 2),
                      (0, 0)))
    x = jnp.concatenate([x2, x1], axis=-1)

    def conv_bn_relu(x, w_pt, s, t):
        w = jnp.transpose(w_pt, (2, 3, 1, 0))             # (3,3,Cin,Cout)
        H, W = x.shape[1], x.shape[2]
        xp = jnp.pad(x, ((0, 0), (1, 1), (1, 1), (0, 0)))
        acc = jnp.zeros((x.shape[0], H, W, w.shape[-1]), jnp.float32)
        for dy in range(3):
            for dx in range(3):
                acc += jnp.einsum("nhwi,io->nhwo",
                                  xp[:, dy:dy + H, dx:dx + W, :], w[dy, dx],
                                  precision=jax.lax.Precision.HIGHEST)
        return jnp.maximum(acc * s + t, 0.0)

    h = conv_bn_relu(x, raw["w1"], raw["s1v"], raw["t1v"])
    y = conv_bn_relu(h, raw["w2"], raw["s2v"], raw["t2v"])
    return jnp.transpose(y, (0, 3, 1, 2))


if __name__ == "__main__":
    key = jax.random.PRNGKey(0)
    k_x1, k_x2, k_p = jax.random.split(key, 3)

    # Up(in_channels=8, out_channels=8):
    #   x1: low-res feature map (4 ch, 8x8), x2: skip connection (4 ch, 16x16)
    N, C1, C2 = 2, 4, 4
    out_channels = 8
    H2 = W2 = 16

    x1 = jax.random.normal(k_x1, (N, C1, 8, 8), jnp.float32)
    x2 = jax.random.normal(k_x2, (N, C2, H2, W2), jnp.float32)

    raw, kparams = make_up_params(k_p, C2, C1, out_channels, W2)

    out = jax.jit(up_forward)(x1, x2, kparams)
    out = jax.block_until_ready(out)
    assert out.shape == (N, out_channels, H2, W2), out.shape

    # numerical sanity check against the pure-JAX reference
    ref = reference_up_forward(x1, x2, raw)
    err = float(jnp.max(jnp.abs(out - ref)))
    assert err < 5e-2, f"max abs err {err}"

    print("KERNEL_OK")
</pallas_src>

<mosaic_0001>
module attributes {stable_mosaic.version = 11 : i64} {
  func.func @_up_doubleconv_kernel(%arg0: i32, %arg1: memref<1x16x64xf32, #tpu.memory_space<vmem>>, %arg2: memref<1x16x64xf32, #tpu.memory_space<vmem>>, %arg3: memref<3x64x128xf32, #tpu.memory_space<vmem>>, %arg4: memref<3x64x128xf32, #tpu.memory_space<vmem>>, %arg5: memref<1x128xf32, #tpu.memory_space<vmem>>, %arg6: memref<1x128xf32, #tpu.memory_space<vmem>>, %arg7: memref<3x128x128xf32, #tpu.memory_space<vmem>>, %arg8: memref<1x128xf32, #tpu.memory_space<vmem>>, %arg9: memref<1x128xf32, #tpu.memory_space<vmem>>, %arg10: memref<1x16x128xf32, #tpu.memory_space<vmem>>, %arg11: memref<18x64xf32, #tpu.memory_space<vmem>>, %arg12: memref<18x64xf32, #tpu.memory_space<vmem>>, %arg13: memref<18x128xf32, #tpu.memory_space<vmem>>) attributes {dimension_semantics = [#tpu.dimension_semantics<parallel>], iteration_bounds = array<i64: 2>, scalar_prefetch = 0 : i64, scratch_operands = 3 : i64, tpu.core_type = #tpu.core_type<tc>, window_params = [{transform_indices = @transform_0, window_bounds = array<i64: 1, 16, 64>}, {transform_indices = @transform_1, window_bounds = array<i64: 1, 16, 64>}, {pipeline_mode = #tpu.pipeline_mode<synchronous>, transform_indices = @transform_2, window_bounds = array<i64: 3, 64, 128>}, {pipeline_mode = #tpu.pipeline_mode<synchronous>, transform_indices = @transform_3, window_bounds = array<i64: 3, 64, 128>}, {pipeline_mode = #tpu.pipeline_mode<synchronous>, transform_indices = @transform_4, window_bounds = array<i64: 1, 128>}, {pipeline_mode = #tpu.pipeline_mode<synchronous>, transform_indices = @transform_5, window_bounds = array<i64: 1, 128>}, {pipeline_mode = #tpu.pipeline_mode<synchronous>, transform_indices = @transform_6, window_bounds = array<i64: 3, 128, 128>}, {pipeline_mode = #tpu.pipeline_mode<synchronous>, transform_indices = @transform_7, window_bounds = array<i64: 1, 128>}, {pipeline_mode = #tpu.pipeline_mode<synchronous>, transform_indices = @transform_8, window_bounds = array<i64: 1, 128>}, {transform_indices = @transform_9, window_bounds = array<i64: 1, 16, 128>}]} {
    %cst = arith.constant 0.000000e+00 : f32
    %0 = vector.broadcast %cst : f32 to vector<18x64xf32>
    %c0 = arith.constant 0 : index
    %c0_0 = arith.constant 0 : index
    %1 = vector.load %arg11[%c0, %c0_0] : memref<18x64xf32, #tpu.memory_space<vmem>>, vector<18x64xf32>
    tpu.vector_store %arg11[%c0, %c0_0], %0 {strides = array<i32>} : memref<18x64xf32, #tpu.memory_space<vmem>>, vector<18x64xf32>,
    %cst_1 = arith.constant 0.000000e+00 : f32
    %2 = vector.broadcast %cst_1 : f32 to vector<18x64xf32>
    %c0_2 = arith.constant 0 : index
    %c0_3 = arith.constant 0 : index
    %3 = vector.load %arg12[%c0_2, %c0_3] : memref<18x64xf32, #tpu.memory_space<vmem>>, vector<18x64xf32>
    tpu.vector_store %arg12[%c0_2, %c0_3], %2 {strides = array<i32>} : memref<18x64xf32, #tpu.memory_space<vmem>>, vector<18x64xf32>,
    %c0_4 = arith.constant 0 : index
    %c0_5 = arith.constant 0 : index
    %c0_6 = arith.constant 0 : index
    %4 = vector.load %arg1[%c0_4, %c0_5, %c0_6] : memref<1x16x64xf32, #tpu.memory_space<vmem>>, vector<1x16x64xf32>
    %5 = vector.shape_cast %4 : vector<1x16x64xf32> to vector<16x64xf32>
    %c1 = arith.constant 1 : index
    %c0_7 = arith.constant 0 : index
    %6 = vector.load %arg11[%c1, %c0_7] : memref<18x64xf32, #tpu.memory_space<vmem>>, vector<16x64xf32>
    tpu.vector_store %arg11[%c1, %c0_7], %5 {strides = array<i32>} : memref<18x64xf32, #tpu.memory_space<vmem>>, vector<16x64xf32>,
    %c0_8 = arith.constant 0 : index
    %c0_9 = arith.constant 0 : index
    %c0_10 = arith.constant 0 : index
    %7 = vector.load %arg2[%c0_8, %c0_9, %c0_10] : memref<1x16x64xf32, #tpu.memory_space<vmem>>, vector<1x16x64xf32>
    %8 = vector.shape_cast %7 : vector<1x16x64xf32> to vector<16x64xf32>
    %c1_11 = arith.constant 1 : index
    %c0_12 = arith.constant 0 : index
    %9 = vector.load %arg12[%c1_11, %c0_12] : memref<18x64xf32, #tpu.memory_space<vmem>>, vector<16x64xf32>
    tpu.vector_store %arg12[%c1_11, %c0_12], %8 {strides = array<i32>} : memref<18x64xf32, #tpu.memory_space<vmem>>, vector<16x64xf32>,
    %cst_13 = arith.constant 0.000000e+00 : f32
    %10 = vector.broadcast %cst_13 : f32 to vector<16x128xf32>
    %c0_14 = arith.constant 0 : index
    %c0_15 = arith.constant 0 : index
    %11 = vector.load %arg11[%c0_14, %c0_15] : memref<18x64xf32, #tpu.memory_space<vmem>>, vector<16x64xf32>
    %c0_16 = arith.constant 0 : index
    %c0_17 = arith.constant 0 : index
    %c0_18 = arith.constant 0 : index
    %12 = vector.load %arg3[%c0_16, %c0_17, %c0_18] : memref<3x64x128xf32, #tpu.memory_space<vmem>>, vector<1x64x128xf32>
    %13 = vector.shape_cast %12 : vector<1x64x128xf32> to vector<64x128xf32>
    %cst_19 = arith.constant dense<0.000000e+00> : vector<16x128xf32>
    %14 = tpu.matmul %11, %13, %cst_19 {dimension_numbers = #tpu.dot_dimension_numbers<[1], [0], [0], [1], [0, 0, 1, 1], [], []>} : vector<16x64xf32>, vector<64x128xf32>, vector<16x128xf32> -> vector<16x128xf32>
    %15 = arith.addf %10, %14 : vector<16x128xf32>
    %c0_20 = arith.constant 0 : index
    %c0_21 = arith.constant 0 : index
    %16 = vector.load %arg12[%c0_20, %c0_21] : memref<18x64xf32, #tpu.memory_space<vmem>>, vector<16x64xf32>
    %c0_22 = arith.constant 0 : index
    %c0_23 = arith.constant 0 : index
    %c0_24 = arith.constant 0 : index
    %17 = vector.load %arg4[%c0_22, %c0_23, %c0_24] : memref<3x64x128xf32, #tpu.memory_space<vmem>>, vector<1x64x128xf32>
    %18 = vector.shape_cast %17 : vector<1x64x128xf32> to vector<64x128xf32>
    %cst_25 = arith.constant dense<0.000000e+00> : vector<16x128xf32>
    %19 = tpu.matmul %16, %18, %cst_25 {dimension_numbers = #tpu.dot_dimension_numbers<[1], [0], [0], [1], [0, 0, 1, 1], [], []>} : vector<16x64xf32>, vector<64x128xf32>, vector<16x128xf32> -> vector<16x128xf32>
    %20 = arith.addf %15, %19 : vector<16x128xf32>
    %c1_26 = arith.constant 1 : index
    %c0_27 = arith.constant 0 : index
    %21 = vector.load %arg11[%c1_26, %c0_27] : memref<18x64xf32, #tpu.memory_space<vmem>>, vector<16x64xf32>
    %c1_28 = arith.constant 1 : index
    %c0_29 = arith.constant 0 : index
    %c0_30 = arith.constant 0 : index
    %22 = vector.load %arg3[%c1_28, %c0_29, %c0_30] : memref<3x64x128xf32, #tpu.memory_space<vmem>>, vector<1x64x128xf32>
    %23 = vector.shape_cast %22 : vector<1x64x128xf32> to vector<64x128xf32>
    %cst_31 = arith.constant dense<0.000000e+00> : vector<16x128xf32>
    %24 = tpu.matmul %21, %23, %cst_31 {dimension_numbers = #tpu.dot_dimension_numbers<[1], [0], [0], [1], [0, 0, 1, 1], [], []>} : vector<16x64xf32>, vector<64x128xf32>, vector<16x128xf32> -> vector<16x128xf32>
    %25 = arith.addf %20, %24 : vector<16x128xf32>
    %c1_32 = arith.constant 1 : index
    %c0_33 = arith.constant 0 : index
    %26 = vector.load %arg12[%c1_32, %c0_33] : memref<18x64xf32, #tpu.memory_space<vmem>>, vector<16x64xf32>
    %c1_34 = arith.constant 1 : index
    %c0_35 = arith.constant 0 : index
    %c0_36 = arith.constant 0 : index
    %27 = vector.load %arg4[%c1_34, %c0_35, %c0_36] : memref<3x64x128xf32, #tpu.memory_space<vmem>>, vector<1x64x128xf32>
    %28 = vector.shape_cast %27 : vector<1x64x128xf32> to vector<64x128xf32>
    %cst_37 = arith.constant dense<0.000000e+00> : vector<16x128xf32>
    %29 = tpu.matmul %26, %28, %cst_37 {dimension_numbers = #tpu.dot_dimension_numbers<[1], [0], [0], [1], [0, 0, 1, 1], [], []>} : vector<16x64xf32>, vector<64x128xf32>, vector<16x128xf32> -> vector<16x128xf32>
    %30 = arith.addf %25, %29 : vector<16x128xf32>
    %c2 = arith.constant 2 : index
    %c0_38 = arith.constant 0 : index
    %31 = vector.load %arg11[%c2, %c0_38] : memref<18x64xf32, #tpu.memory_space<vmem>>, vector<16x64xf32>
    %c2_39 = arith.constant 2 : index
    %c0_40 = arith.constant 0 : index
    %c0_41 = arith.constant 0 : index
    %32 = vector.load %arg3[%c2_39, %c0_40, %c0_41] : memref<3x64x128xf32, #tpu.memory_space<vmem>>, vector<1x64x128xf32>
    %33 = vector.shape_cast %32 : vector<1x64x128xf32> to vector<64x128xf32>
    %cst_42 = arith.constant dense<0.000000e+00> : vector<16x128xf32>
    %34 = tpu.matmul %31, %33, %cst_42 {dimension_numbers = #tpu.dot_dimension_numbers<[1], [0], [0], [1], [0, 0, 1, 1], [], []>} : vector<16x64xf32>, vector<64x128xf32>, vector<16x128xf32> -> vector<16x128xf32>
    %35 = arith.addf %30, %34 : vector<16x128xf32>
    %c2_43 = arith.constant 2 : index
    %c0_44 = arith.constant 0 : index
    %36 = vector.load %arg12[%c2_43, %c0_44] : memref<18x64xf32, #tpu.memory_space<vmem>>, vector<16x64xf32>
    %c2_45 = arith.constant 2 : index
    %c0_46 = arith.constant 0 : index
    %c0_47 = arith.constant 0 : index
    %37 = vector.load %arg4[%c2_45, %c0_46, %c0_47] : memref<3x64x128xf32, #tpu.memory_space<vmem>>, vector<1x64x128xf32>
    %38 = vector.shape_cast %37 : vector<1x64x128xf32> to vector<64x128xf32>
    %cst_48 = arith.constant dense<0.000000e+00> : vector<16x128xf32>
    %39 = tpu.matmul %36, %38, %cst_48 {dimension_numbers = #tpu.dot_dimension_numbers<[1], [0], [0], [1], [0, 0, 1, 1], [], []>} : vector<16x64xf32>, vector<64x128xf32>, vector<16x128xf32> -> vector<16x128xf32>
    %40 = arith.addf %35, %39 : vector<16x128xf32>
    %c0_49 = arith.constant 0 : index
    %c0_50 = arith.constant 0 : index
    %41 = vector.load %arg5[%c0_49, %c0_50] : memref<1x128xf32, #tpu.memory_space<vmem>>, vector<1x128xf32>
    %42 = vector.broadcast %41 : vector<1x128xf32> to vector<16x128xf32>
    %43 = arith.mulf %40, %42 : vector<16x128xf32>
    %c0_51 = arith.constant 0 : index
    %c0_52 = arith.constant 0 : index
    %44 = vector.load %arg6[%c0_51, %c0_52] : memref<1x128xf32, #tpu.memory_space<vmem>>, vector<1x128xf32>
    %45 = vector.broadcast %44 : vector<1x128xf32> to vector<16x128xf32>
    %46 = arith.addf %43, %45 : vector<16x128xf32>
    %cst_53 = arith.constant 0.000000e+00 : f32
    %47 = vector.broadcast %cst_53 : f32 to vector<16x128xf32>
    %48 = arith.maximumf %46, %47 : vector<16x128xf32>
    %cst_54 = arith.constant 0.000000e+00 : f32
    %49 = vector.broadcast %cst_54 : f32 to vector<18x128xf32>
    %c0_55 = arith.constant 0 : index
    %c0_56 = arith.constant 0 : index
    %50 = vector.load %arg13[%c0_55, %c0_56] : memref<18x128xf32, #tpu.memory_space<vmem>>, vector<18x128xf32>
    tpu.vector_store %arg13[%c0_55, %c0_56], %49 {strides = array<i32>} : memref<18x128xf32, #tpu.memory_space<vmem>>, vector<18x128xf32>,
    %c1_57 = arith.constant 1 : index
    %c0_58 = arith.constant 0 : index
    %51 = vector.load %arg13[%c1_57, %c0_58] : memref<18x128xf32, #tpu.memory_space<vmem>>, vector<16x128xf32>
    tpu.vector_store %arg13[%c1_57, %c0_58], %48 {strides = array<i32>} : memref<18x128xf32, #tpu.memory_space<vmem>>, vector<16x128xf32>,
    %cst_59 = arith.constant 0.000000e+00 : f32
    %52 = vector.broadcast %cst_59 : f32 to vector<16x128xf32>
    %c0_60 = arith.constant 0 : index
    %c0_61 = arith.constant 0 : index
    %53 = vector.load %arg13[%c0_60, %c0_61] : memref<18x128xf32, #tpu.memory_space<vmem>>, vector<16x128xf32>
    %c0_62 = arith.constant 0 : index
    %c0_63 = arith.constant 0 : index
    %c0_64 = arith.constant 0 : index
    %54 = vector.load %arg7[%c0_62, %c0_63, %c0_64] : memref<3x128x128xf32, #tpu.memory_space<vmem>>, vector<1x128x128xf32>
    %55 = vector.shape_cast %54 : vector<1x128x128xf32> to vector<128x128xf32>
    %cst_65 = arith.constant dense<0.000000e+00> : vector<16x128xf32>
    %56 = tpu.matmul %53, %55, %cst_65 {dimension_numbers = #tpu.dot_dimension_numbers<[1], [0], [0], [1], [0, 0, 1, 1], [], []>} : vector<16x128xf32>, vector<128x128xf32>, vector<16x128xf32> -> vector<16x128xf32>
    %57 = arith.addf %52, %56 : vector<16x128xf32>
    %c1_66 = arith.constant 1 : index
    %c0_67 = arith.constant 0 : index
    %58 = vector.load %arg13[%c1_66, %c0_67] : memref<18x128xf32, #tpu.memory_space<vmem>>, vector<16x128xf32>
    %c1_68 = arith.constant 1 : index
    %c0_69 = arith.constant 0 : index
    %c0_70 = arith.constant 0 : index
    %59 = vector.load %arg7[%c1_68, %c0_69, %c0_70] : memref<3x128x128xf32, #tpu.memory_space<vmem>>, vector<1x128x128xf32>
    %60 = vector.shape_cast %59 : vector<1x128x128xf32> to vector<128x128xf32>
    %cst_71 = arith.constant dense<0.000000e+00> : vector<16x128xf32>
    %61 = tpu.matmul %58, %60, %cst_71 {dimension_numbers = #tpu.dot_dimension_numbers<[1], [0], [0], [1], [0, 0, 1, 1], [], []>} : vector<16x128xf32>, vector<128x128xf32>, vector<16x128xf32> -> vector<16x128xf32>
    %62 = arith.addf %57, %61 : vector<16x128xf32>
    %c2_72 = arith.constant 2 : index
    %c0_73 = arith.constant 0 : index
    %63 = vector.load %arg13[%c2_72, %c0_73] : memref<18x128xf32, #tpu.memory_space<vmem>>, vector<16x128xf32>
    %c2_74 = arith.constant 2 : index
    %c0_75 = arith.constant 0 : index
    %c0_76 = arith.constant 0 : index
    %64 = vector.load %arg7[%c2_74, %c0_75, %c0_76] : memref<3x128x128xf32, #tpu.memory_space<vmem>>, vector<1x128x128xf32>
    %65 = vector.shape_cast %64 : vector<1x128x128xf32> to vector<128x128xf32>
    %cst_77 = arith.constant dense<0.000000e+00> : vector<16x128xf32>
    %66 = tpu.matmul %63, %65, %cst_77 {dimension_numbers = #tpu.dot_dimension_numbers<[1], [0], [0], [1], [0, 0, 1, 1], [], []>} : vector<16x128xf32>, vector<128x128xf32>, vector<16x128xf32> -> vector<16x128xf32>
    %67 = arith.addf %62, %66 : vector<16x128xf32>
    %c0_78 = arith.constant 0 : index
    %c0_79 = arith.constant 0 : index
    %68 = vector.load %arg8[%c0_78, %c0_79] : memref<1x128xf32, #tpu.memory_space<vmem>>, vector<1x128xf32>
    %69 = vector.broadcast %68 : vector<1x128xf32> to vector<16x128xf32>
    %70 = arith.mulf %67, %69 : vector<16x128xf32>
    %c0_80 = arith.constant 0 : index
    %c0_81 = arith.constant 0 : index
    %71 = vector.load %arg9[%c0_80, %c0_81] : memref<1x128xf32, #tpu.memory_space<vmem>>, vector<1x128xf32>
    %72 = vector.broadcast %71 : vector<1x128xf32> to vector<16x128xf32>
    %73 = arith.addf %70, %72 : vector<16x128xf32>
    %cst_82 = arith.constant 0.000000e+00 : f32
    %74 = vector.broadcast %cst_82 : f32 to vector<16x128xf32>
    %75 = arith.maximumf %73, %74 : vector<16x128xf32>
    %76 = vector.shape_cast %75 : vector<16x128xf32> to vector<1x16x128xf32>
    %c0_83 = arith.constant 0 : index
    %c0_84 = arith.constant 0 : index
    %c0_85 = arith.constant 0 : index
    %77 = vector.load %arg10[%c0_83, %c0_84, %c0_85] : memref<1x16x128xf32, #tpu.memory_space<vmem>>, vector<1x16x128xf32>
    tpu.vector_store %arg10[%c0_83, %c0_84, %c0_85], %76 {strides = array<i32>} : memref<1x16x128xf32, #tpu.memory_space<vmem>>, vector<1x16x128xf32>,
    return
  }
  func.func @transform_0(%arg0: i32) -> (i32, i32, i32) {
    %c0_i32 = arith.constant 0 : i32
    %c0_i32_0 = arith.constant 0 : i32
    %c0_i32_1 = arith.constant 0 : i32
    return %arg0, %c0_i32, %c0_i32_0 : i32, i32, i32
  }
  func.func @transform_1(%arg0: i32) -> (i32, i32, i32) {
    %c0_i32 = arith.constant 0 : i32
    %c0_i32_0 = arith.constant 0 : i32
    %c0_i32_1 = arith.constant 0 : i32
    return %arg0, %c0_i32, %c0_i32_0 : i32, i32, i32
  }
  func.func @transform_2(%arg0: i32) -> (i32, i32, i32) {
    %c0_i32 = arith.constant 0 : i32
    %c0_i32_0 = arith.constant 0 : i32
    %c0_i32_1 = arith.constant 0 : i32
    %c0_i32_2 = arith.constant 0 : i32
    return %c0_i32, %c0_i32_0, %c0_i32_1 : i32, i32, i32
  }
  func.func @transform_3(%arg0: i32) -> (i32, i32, i32) {
    %c0_i32 = arith.constant 0 : i32
    %c0_i32_0 = arith.constant 0 : i32
    %c0_i32_1 = arith.constant 0 : i32
    %c0_i32_2 = arith.constant 0 : i32
    return %c0_i32, %c0_i32_0, %c0_i32_1 : i32, i32, i32
  }
  func.func @transform_4(%arg0: i32) -> (i32, i32) {
    %c0_i32 = arith.constant 0 : i32
    %c0_i32_0 = arith.constant 0 : i32
    %c0_i32_1 = arith.constant 0 : i32
    return %c0_i32, %c0_i32_0 : i32, i32
  }
  func.func @transform_5(%arg0: i32) -> (i32, i32) {
    %c0_i32 = arith.constant 0 : i32
    %c0_i32_0 = arith.constant 0 : i32
    %c0_i32_1 = arith.constant 0 : i32
    return %c0_i32, %c0_i32_0 : i32, i32
  }
  func.func @transform_6(%arg0: i32) -> (i32, i32, i32) {
    %c0_i32 = arith.constant 0 : i32
    %c0_i32_0 = arith.constant 0 : i32
    %c0_i32_1 = arith.constant 0 : i32
    %c0_i32_2 = arith.constant 0 : i32
    return %c0_i32, %c0_i32_0, %c0_i32_1 : i32, i32, i32
  }
  func.func @transform_7(%arg0: i32) -> (i32, i32) {
    %c0_i32 = arith.constant 0 : i32
    %c0_i32_0 = arith.constant 0 : i32
    %c0_i32_1 = arith.constant 0 : i32
    return %c0_i32, %c0_i32_0 : i32, i32
  }
  func.func @transform_8(%arg0: i32) -> (i32, i32) {
    %c0_i32 = arith.constant 0 : i32
    %c0_i32_0 = arith.constant 0 : i32
    %c0_i32_1 = arith.constant 0 : i32
    return %c0_i32, %c0_i32_0 : i32, i32
  }
  func.func @transform_9(%arg0: i32) -> (i32, i32, i32) {
    %c0_i32 = arith.constant 0 : i32
    %c0_i32_0 = arith.constant 0 : i32
    %c0_i32_1 = arith.constant 0 : i32
    return %arg0, %c0_i32, %c0_i32_0 : i32, i32, i32
  }
}

</mosaic_0001>

<bundles_post_ra>
// kernel: up_forward.1
= control target key start
LH: loop header
LB: loop body
LE: loop exit
PB: predicated region body
PF: predicated region fallthrough
CT: control target
= control target key end

     0   :  { %s1821_s30 = smov 0   ;;  %s2172_s0 = inlined_call_operand.vmem [shape: f32[2,16,64], index: 0, kind: input, shape index: {}]   ;;  %s2173_s1 = inlined_call_operand.vmem [shape: f32[2,16,64], index: 1, kind: input, shape index: {}]   ;;  %s2174_s2 = inlined_call_operand.vmem [shape: f32[3,64,128], index: 2, kind: input, shape index: {}]   ;;  %s2175_s3 = inlined_call_operand.vmem [shape: f32[3,64,128], index: 3, kind: input, shape index: {}]   ;;  %s2176_s4 = inlined_call_operand.vmem [shape: f32[1,128], index: 4, kind: input, shape index: {}]   ;;  %s2177_s5 = inlined_call_operand.vmem [shape: f32[1,128], index: 5, kind: input, shape index: {}]   ;;  %s2178_s6 = inlined_call_operand.vmem [shape: f32[3,128,128], index: 6, kind: input, shape index: {}]   ;;  %s2179_s7 = inlined_call_operand.vmem [shape: f32[1,128], index: 7, kind: input, shape index: {}]   ;;  %s2180_s8 = inlined_call_operand.vmem [shape: f32[1,128], index: 8, kind: input, shape index: {}]   ;;  %s2181_s9 = inlined_call_operand.vmem [shape: f32[2,16,128], index: 9, kind: output, shape index: {}]  }
   0x1 LB: > { %s1324_s10 = sadd.s32 4294967295, %s1768_s30   ;;  %p1328_p0 = scmp.ge.s32.totalorder %s1768_s30, 1  ;;  %s1768_s30 = sphi %s1821_s30, %s19_s30  }
   0x2   : > { %p297_p1 = scmp.lt.s32.totalorder %s1768_s30, 3 }
   0x4   : > { %p298_p2 = pnand %p1328_p0, %p297_p1 }
   0x5   : > { %p1835_p3 = scmp.lt.s32.totalorder (!%p298_p2), %s1324_s10, 1 }
   0x6   : > { %301 = sbr.rel (%p298_p2) target bundleno = 517 (0x205), region = 56 }
   0xb   : > { %v388_v0 = vld [vmem:[%s2175_s3 + $0x38] sm:$0xff]  ;;  %v387_v1 = vld [vmem:[%s2175_s3 + $0x30] sm:$0xff]  ;;  %vm353_vm0 = vcmask 523264   ;;  %v1770_v2 = vmov 0.0   ;;  %vm356_vm1 = vcmask 517120   ;;  %v386_v3 = vld [vmem:[%s2175_s3 + $0x28] sm:$0xff] }
   0xc   : > { %1534 = vmatprep.subr.mxu1 %v388_v0  ;;  %358 = vst.msk [vmem:[#allocation3] sm:$0xff] %vm353_vm0, %v1770_v2  ;;  %359 = vst.msk [vmem:[#allocation3 + $0x8] sm:$0xff] %vm353_vm0, %v1770_v2  ;;  %s2184_s10 = smov (!%p1835_p3, %s1324_s10), 1  ;;  %v1346_v4 = vld [vmem:[%s2174_s2 + $0x78] sm:$0xff]  ;;  %v385_v5 = vld [vmem:[%s2175_s3 + $0x20] sm:$0xff] }
   0xd   : > { %354 = vst.msk [vmem:[#allocation2] sm:$0xff] %vm353_vm0, %v1770_v2  ;;  %355 = vst.msk [vmem:[#allocation2 + $0x8] sm:$0xff] %vm353_vm0, %v1770_v2  ;;  %1535 = vmatpush3.msra.mxu1 %v388_v0  ;;  %s1854_s22 = sshll.u32 %s2184_s10, 4  ;;  %1572 = vmatprep.subr.mxu0 %v1346_v4  ;;  %v1345_v6 = vld [vmem:[%s2174_s2 + $0x70] sm:$0xff]  ;;  %v1344_v7 = vld [vmem:[%s2174_s2 + $0x68] sm:$0xff] }
   0xe   : > { %947 = vst [vmem:[#allocation4] sm:$0xff] %v1770_v2  ;;  %948 = vst [vmem:[#allocation4 + $0x8] sm:$0xff] %v1770_v2  ;;  %1536 = vmatprep.subr.mxu1 %v387_v1  ;;  %s347_s27 = scalar_lea.vmem %s2173_s1, %s1854_s22  ;;  %1573 = vmatpush3.msra.mxu0 %v1346_v4  ;;  %s342_s12 = scalar_lea.vmem %s2172_s0, %s1854_s22  ;;  %v384_v8 = vld [vmem:[%s2175_s3 + $0x18] sm:$0xff]  ;;  %v1343_v11 = vld [vmem:[%s2174_s2 + $0x60] sm:$0xff] }
   0xf   : > { %949 = vst [vmem:[#allocation4 + $0x10] sm:$0x3] %v1770_v2  ;;  %357 = vst.msk [vmem:[#allocation2 + $0x10] sm:$0x3] %vm356_vm1, %v1770_v2  ;;  %1537 = vmatpush3.msra.mxu1 %v387_v1  ;;  %v365_v9 = vld [vmem:[%s347_s27] sm:$0xff]  ;;  %v366_v10 = vld [vmem:[%s347_s27 + $0x8] sm:$0xff]  ;;  %1574 = vmatprep.subr.mxu0 %v1345_v6  ;;  %s352_s10 = scalar_lea.vmem %s2181_s9, %s1854_s22 }
  0x10   : > { %360 = vst.msk [vmem:[#allocation3 + $0x10] sm:$0x3] %vm356_vm1, %v1770_v2  ;;  %1538 = vmatprep.subr.mxu1 %v386_v3  ;;  %1575 = vmatpush3.msra.mxu0 %v1345_v6  ;;  %v383_v12 = vld [vmem:[%s2175_s3 + $0x10] sm:$0xff]  ;;  %v361_v13 = vld [vmem:[%s342_s12] sm:$0xff]  ;;  %v362_v14 = vld [vmem:[%s342_s12 + $0x8] sm:$0xff] }
  0x11   : > { %1539 = vmatpush3.msra.mxu1 %v386_v3  ;;  %367 = vst.msk [vmem:[#allocation3 + $0x1] sm:$0xff] %vm353_vm0, %v365_v9  ;;  %368 = vst.msk [vmem:[#allocation3 + $0x9] sm:$0xff] %vm353_vm0, %v366_v10  ;;  %1576 = vmatprep.subr.mxu0 %v1344_v7  ;;  %v1342_v15 = vld [vmem:[%s2174_s2 + $0x58] sm:$0xff]  ;;  %v382_v16 = vld [vmem:[%s2175_s3 + $0x8] sm:$0xff] }
  0x12   : > { %1540 = vmatprep.subr.mxu1 %v385_v5  ;;  %1577 = vmatpush3.msra.mxu0 %v1344_v7  ;;  %363 = vst.msk [vmem:[#allocation2 + $0x1] sm:$0xff] %vm353_vm0, %v361_v13  ;;  %364 = vst.msk [vmem:[#allocation2 + $0x9] sm:$0xff] %vm353_vm0, %v362_v14  ;;  %v1341_v17 = vld [vmem:[%s2174_s2 + $0x50] sm:$0xff]  ;;  %v381_v18 = vld [vmem:[%s2175_s3] sm:$0xff] }
  0x13   : > { %1541 = vmatpush3.msra.mxu1 %v385_v5  ;;  %1578 = vmatprep.subr.mxu0 %v1343_v11  ;;  %v378_v21 = vld [vmem:[%s2174_s2 + $0x38] sm:$0xff]  ;;  %v1340_v22 = vld [vmem:[%s2174_s2 + $0x48] sm:$0xff]  ;;  %v377_v23 = vld [vmem:[%s2174_s2 + $0x30] sm:$0xff] }
  0x14   : > { %1542 = vmatprep.subr.mxu1 %v384_v8  ;;  %1579 = vmatpush3.msra.mxu0 %v1343_v11  ;;  %v376_v25 = vld [vmem:[%s2174_s2 + $0x28] sm:$0xff]  ;;  %v1339_v26 = vld [vmem:[%s2174_s2 + $0x40] sm:$0xff]  ;;  %v374_v30 = vld [vmem:[%s2174_s2 + $0x18] sm:$0xff] }
  0x15   : > { %1543 = vmatpush3.msra.mxu1 %v384_v8  ;;  %1580 = vmatprep.subr.mxu0 %v1342_v15  ;;  %v375_v27 = vld [vmem:[%s2174_s2 + $0x20] sm:$0xff]  ;;  %v1366_v31 = vld [vmem:[%s2174_s2 + $0xb8] sm:$0xff]  ;;  %v373_v32 = vld [vmem:[%s2174_s2 + $0x10] sm:$0xff] }
  0x16   : > { %1544 = vmatprep.subr.mxu1 %v383_v12  ;;  %1581 = vmatpush3.msra.mxu0 %v1342_v15  ;;  %v1365_v33 = vld [vmem:[%s2174_s2 + $0xb0] sm:$0xff]  ;;  %v372_v34 = vld [vmem:[%s2174_s2 + $0x8] sm:$0xff]  ;;  %v371_v36 = vld [vmem:[%s2174_s2] sm:$0xff] }
  0x17   : > { %1545 = vmatpush3.msra.mxu1 %v383_v12  ;;  %1582 = vmatprep.subr.mxu0 %v1341_v17  ;;  %v1364_v35 = vld [vmem:[%s2174_s2 + $0xa8] sm:$0xff]  ;;  %v1363_v37 = vld [vmem:[%s2174_s2 + $0xa0] sm:$0xff]  ;;  %v1356_v39 = vld [vmem:[%s2175_s3 + $0x78] sm:$0xff] }
  0x18   : > { %1546 = vmatprep.subr.mxu1 %v382_v16  ;;  %v379_v19 = vld [vmem:[#allocation3] sm:$0xff]  ;;  %v380_v20 = vld [vmem:[#allocation3 + $0x8] sm:$0xff]  ;;  %1583 = vmatpush3.msra.mxu0 %v1341_v17  ;;  %v1355_v41 = vld [vmem:[%s2175_s3 + $0x70] sm:$0xff] }
  0x19   : > { %1547 = vmatpush3.msra.mxu1 %v382_v16  ;;  %1550 = vmatprep.mubr.msk.f32.mxu1 %vm353_vm0, %v379_v19  ;;  %v369_v24 = vld [vmem:[#allocation2] sm:$0xff]  ;;  %v552_v29 = vld [vmem:[#allocation2 + $0x9] sm:$0xff]  ;;  %v1362_v40 = vld [vmem:[%s2174_s2 + $0x98] sm:$0xff] }
  0x1a   : > { %1548 = vmatprep.subr.mxu1 %v381_v18  ;;  %1584 = vmatprep.subr.mxu0 %v1340_v22  ;;  %v551_v28 = vld [vmem:[#allocation2 + $0x1] sm:$0xff]  ;;  %v1361_v42 = vld [vmem:[%s2174_s2 + $0x90] sm:$0xff]  ;;  %v645_v46 = vld [vmem:[#allocation3 + $0x1] sm:$0xff] }
  0x1b   : > { %1549 = vmatpush3.msra.mxu1 %v381_v18  ;;  %1585 = vmatpush3.msra.mxu0 %v1340_v22  ;;  %v370_v38 = vld [vmem:[#allocation2 + $0x8] sm:$0xff]  ;;  %v1353_v45 = vld [vmem:[%s2175_s3 + $0x60] sm:$0xff]  ;;  %v1352_v47 = vld [vmem:[%s2175_s3 + $0x58] sm:$0xff] }
  0x1c   : > { %1551 = vmatmul.mubr.msk.f32.vlgmr.msra.gmra.mxu1 %vm353_vm0, %v380_v20  ;;  %1553 = vmatprep.subr.mxu1 %v378_v21  ;;  %v1354_v43 = vld [vmem:[%s2175_s3 + $0x68] sm:$0xff]  ;;  %v1359_v48 = vld [vmem:[%s2174_s2 + $0x80] sm:$0xff]  ;;  %v1351_v49 = vld [vmem:[%s2175_s3 + $0x50] sm:$0xff] }
  0x1d   : > { %1554 = vmatpush3.msra.mxu1 %v378_v21  ;;  %1569 = vmatprep.mubr.msk.f32.mxu1 %vm353_vm0, %v369_v24  ;;  %v1360_v44 = vld [vmem:[%s2174_s2 + $0x88] sm:$0xff]  ;;  %v1349_v53 = vld [vmem:[%s2175_s3 + $0x40] sm:$0xff]  ;;  %v1376_v55 = vld [vmem:[%s2175_s3 + $0xb8] sm:$0xff] }
  0x1e   : > { %1555 = vmatprep.subr.mxu1 %v377_v23  ;;  %1586 = vmatprep.subr.mxu0 %v1339_v26  ;;  %v739_v50 = vld [vmem:[#allocation2 + $0x2] sm:$0xff]  ;;  %v740_v51 = vld [vmem:[#allocation2 + $0xa] sm:$0xff]  ;;  %v833_v56 = vld [vmem:[#allocation3 + $0x2] sm:$0xff] }
  0x1f   : > { %1556 = vmatpush3.msra.mxu1 %v377_v23  ;;  %1587 = vmatpush3.msra.mxu0 %v1339_v26  ;;  %v1350_v52 = vld [vmem:[%s2175_s3 + $0x48] sm:$0xff]  ;;  %v1375_v57 = vld [vmem:[%s2175_s3 + $0xb0] sm:$0xff]  ;;  %v1373_v59 = vld [vmem:[%s2175_s3 + $0xa0] sm:$0xff] }
  0x20   : > { %1557 = vmatprep.subr.mxu1 %v376_v25  ;;  %1588 = vmatprep.mubr.msk.f32.mxu0 %vm353_vm0, %v551_v28  ;;  %v646_v54 = vld [vmem:[#allocation3 + $0x9] sm:$0xff]  ;;  %v1372_v60 = vld [vmem:[%s2175_s3 + $0x98] sm:$0xff]  ;;  %v1371_v61 = vld [vmem:[%s2175_s3 + $0x90] sm:$0xff] }
  0x21   : > { %1558 = vmatpush3.msra.mxu1 %v376_v25  ;;  %1589 = vmatmul.mubr.msk.f32.vlgmr.msra.gmra.mxu0 %vm353_vm0, %v552_v29  ;;  %v1374_v58 = vld [vmem:[%s2175_s3 + $0xa8] sm:$0xff]  ;;  %v1369_v63 = vld [vmem:[%s2175_s3 + $0x80] sm:$0xff]  ;;  %v1396_v1 = vld [vmem:[%s2178_s6 + $0xf8] sm:$0xff] }
  0x22   : > { %1559 = vmatprep.subr.mxu1 %v375_v27  ;;  %1610 = vmatprep.subr.mxu0 %v1366_v31  ;;  %v1370_v62 = vld [vmem:[%s2175_s3 + $0x88] sm:$0xff]  ;;  %v1395_v2 = vld [vmem:[%s2178_s6 + $0xf0] sm:$0xff]  ;;  %v1393_v4 = vld [vmem:[%s2178_s6 + $0xe0] sm:$0xff] }
  0x23   : > { %1560 = vmatpush3.msra.mxu1 %v375_v27  ;;  %1611 = vmatpush3.msra.mxu0 %v1366_v31  ;;  %v834_v0 = vld [vmem:[#allocation3 + $0xa] sm:$0xff]  ;;  %v1392_v5 = vld [vmem:[%s2178_s6 + $0xd8] sm:$0xff]  ;;  %v1391_v7 = vld [vmem:[%s2178_s6 + $0xd0] sm:$0xff] }
  0x24   : > { %1561 = vmatprep.subr.mxu1 %v374_v30  ;;  %1612 = vmatprep.subr.mxu0 %v1365_v33  ;;  %v1394_v3 = vld [vmem:[%s2178_s6 + $0xe8] sm:$0xff]  ;;  %v969_v6 = vld [vmem:[%s2178_s6 + $0x78] sm:$0xff]  ;;  %v968_v8 = vld [vmem:[%s2178_s6 + $0x70] sm:$0xff] }
  0x25   : > { %1562 = vmatpush3.msra.mxu1 %v374_v30  ;;  %1613 = vmatpush3.msra.mxu0 %v1365_v33  ;;  %v967_v9 = vld [vmem:[%s2178_s6 + $0x68] sm:$0xff]  ;;  %v966_v11 = vld [vmem:[%s2178_s6 + $0x60] sm:$0xff]  ;;  %v965_v13 = vld [vmem:[%s2178_s6 + $0x58] sm:$0xff] }
  0x26   : > { %1563 = vmatprep.subr.mxu1 %v373_v32  ;;  %1614 = vmatprep.subr.mxu0 %v1364_v35  ;;  %v1390_v10 = vld [vmem:[%s2178_s6 + $0xc8] sm:$0xff]  ;;  %v1389_v12 = vld [vmem:[%s2178_s6 + $0xc0] sm:$0xff]  ;;  %v1388_v14 = vld [vmem:[%s2178_s6 + $0xb8] sm:$0xff] }
  0x27   : > { %1564 = vmatpush3.msra.mxu1 %v373_v32  ;;  %1615 = vmatpush3.msra.mxu0 %v1364_v35  ;;  %v964_v15 = vld [vmem:[%s2178_s6 + $0x50] sm:$0xff]  ;;  %v1386_v17 = vld [vmem:[%s2178_s6 + $0xa8] sm:$0xff]  ;;  %v1385_v19 = vld [vmem:[%s2178_s6 + $0xa0] sm:$0xff] }
  0x28   : > { %1565 = vmatprep.subr.mxu1 %v372_v34  ;;  %1616 = vmatprep.subr.mxu0 %v1363_v37  ;;  %v1387_v16 = vld [vmem:[%s2178_s6 + $0xb0] sm:$0xff]  ;;  %v963_v18 = vld [vmem:[%s2178_s6 + $0x48] sm:$0xff]  ;;  %v962_v20 = vld [vmem:[%s2178_s6 + $0x40] sm:$0xff] }
  0x29   : > { %1566 = vmatpush3.msra.mxu1 %v372_v34  ;;  %1617 = vmatpush3.msra.mxu0 %v1363_v37  ;;  %v1384_v21 = vld [vmem:[%s2178_s6 + $0x98] sm:$0xff]  ;;  %v1383_v23 = vld [vmem:[%s2178_s6 + $0x90] sm:$0xff]  ;;  %v1382_v25 = vld [vmem:[%s2178_s6 + $0x88] sm:$0xff] }
  0x2a   : > { %1567 = vmatprep.subr.mxu1 %v371_v36  ;;  %1618 = vmatprep.subr.mxu0 %v1362_v40  ;;  %v961_v22 = vld [vmem:[%s2178_s6 + $0x38] sm:$0xff]  ;;  %v960_v24 = vld [vmem:[%s2178_s6 + $0x30] sm:$0xff]  ;;  %v959_v26 = vld [vmem:[%s2178_s6 + $0x28] sm:$0xff] }
  0x2b   : > { %1568 = vmatpush3.msra.mxu1 %v371_v36  ;;  %1619 = vmatpush3.msra.mxu0 %v1362_v40  ;;  %v1381_v27 = vld [vmem:[%s2178_s6 + $0x80] sm:$0xff]  ;;  %v1412_v29 = vld [vmem:[%s2178_s6 + $0x178] sm:$0xff]  ;;  %v956_v31 = vld [vmem:[%s2178_s6 + $0x10] sm:$0xff] }
  0x2c   : > { %1570 = vmatmul.mubr.msk.f32.vlgmr.msra.gmra.mxu1 %vm353_vm0, %v370_v38  ;;  %1591 = vmatprep.subr.mxu1 %v1356_v39  ;;  %v958_v28 = vld [vmem:[%s2178_s6 + $0x20] sm:$0xff]  ;;  %v957_v30 = vld [vmem:[%s2178_s6 + $0x18] sm:$0xff]  ;;  %v955_v32 = vld [vmem:[%s2178_s6 + $0x8] sm:$0xff] }
  0x2d   : > { %1592 = vmatpush3.msra.mxu1 %v1356_v39  ;;  %1620 = vmatprep.subr.mxu0 %v1361_v42  ;;  %v954_v33 = vld [vmem:[%s2178_s6] sm:$0xff] }
  0x2e   : > { %1593 = vmatprep.subr.mxu1 %v1355_v41  ;;  %1621 = vmatpush3.msra.mxu0 %v1361_v42 }
  0x2f   : > { %1594 = vmatpush3.msra.mxu1 %v1355_v41  ;;  %1622 = vmatprep.subr.mxu0 %v1360_v44 }
  0x30   : > { %1595 = vmatprep.subr.mxu1 %v1354_v43  ;;  %1607 = vmatprep.mubr.msk.f32.mxu1 %vm353_vm0, %v645_v46 }
  0x31   : > { %1596 = vmatpush3.msra.mxu1 %v1354_v43  ;;  %1623 = vmatpush3.msra.mxu0 %v1360_v44 }
  0x32   : > { %1597 = vmatprep.subr.mxu1 %v1353_v45  ;;  %1624 = vmatprep.subr.mxu0 %v1359_v48 }
  0x33   : > { %1598 = vmatpush3.msra.mxu1 %v1353_v45  ;;  %1625 = vmatpush3.msra.mxu0 %v1359_v48 }
  0x34   : > { %1599 = vmatprep.subr.mxu1 %v1352_v47  ;;  %1626 = vmatprep.mubr.msk.f32.mxu0 %vm353_vm0, %v739_v50 }
  0x35   : > { %1600 = vmatpush3.msra.mxu1 %v1352_v47  ;;  %1627 = vmatmul.mubr.msk.f32.vlgmr.msra.gmra.mxu0 %vm353_vm0, %v740_v51 }
  0x36   : > { %1601 = vmatprep.subr.mxu1 %v1351_v49  ;;  %1648 = vmatprep.subr.mxu0 %v1396_v1 }
  0x37   : > { %1602 = vmatpush3.msra.mxu1 %v1351_v49  ;;  %1649 = vmatpush3.msra.mxu0 %v1396_v1  ;;  %v1410_v1 = vld [vmem:[%s2178_s6 + $0x168] sm:$0xff] }
  0x38   : > { %1603 = vmatprep.subr.mxu1 %v1350_v52  ;;  %1650 = vmatprep.subr.mxu0 %v1395_v2 }
  0x39   : > { %1604 = vmatpush3.msra.mxu1 %v1350_v52  ;;  %1651 = vmatpush3.msra.mxu0 %v1395_v2  ;;  %v1379_v52 = vld [vmem:[%s2176_s4] ss:$0 sm:$0xff] }
  0x3a   : > { %1605 = vmatprep.subr.mxu1 %v1349_v53  ;;  %1652 = vmatprep.subr.mxu0 %v1394_v3  ;;  %v1409_v2 = vld [vmem:[%s2178_s6 + $0x160] sm:$0xff] }
  0x3b   : > { %1606 = vmatpush3.msra.mxu1 %v1349_v53  ;;  %1653 = vmatpush3.msra.mxu0 %v1394_v3  ;;  %v1408_v3 = vld [vmem:[%s2178_s6 + $0x158] sm:$0xff] }
  0x3c   : > { %1608 = vmatmul.mubr.msk.f32.vlgmr.msra.gmra.mxu1 %vm353_vm0, %v646_v54  ;;  %1629 = vmatprep.subr.mxu1 %v1376_v55 }
  0x3d   : > { %1630 = vmatpush3.msra.mxu1 %v1376_v55  ;;  %1645 = vmatprep.mubr.msk.f32.mxu1 %vm353_vm0, %v833_v56  ;;  %v1380_v55 = vld [vmem:[%s2177_s5] ss:$0 sm:$0xff] }
  0x3e   : > { %1631 = vmatprep.subr.mxu1 %v1375_v57  ;;  %1654 = vmatprep.subr.mxu0 %v1393_v4 }
  0x3f   : > { %1632 = vmatpush3.msra.mxu1 %v1375_v57  ;;  %1655 = vmatpush3.msra.mxu0 %v1393_v4 }
  0x40   : > { %1633 = vmatprep.subr.mxu1 %v1374_v58  ;;  %1656 = vmatprep.subr.mxu0 %v1392_v5 }
  0x41   : > { %1634 = vmatpush3.msra.mxu1 %v1374_v58  ;;  %1657 = vmatpush3.msra.mxu0 %v1392_v5 }
  0x42   : > { %1635 = vmatprep.subr.mxu1 %v1373_v59  ;;  %1658 = vmatprep.subr.mxu0 %v1391_v7 }
  0x43   : > { %1636 = vmatpush3.msra.mxu1 %v1373_v59  ;;  %1659 = vmatpush3.msra.mxu0 %v1391_v7  ;;  %v1407_v7 = vld [vmem:[%s2178_s6 + $0x150] sm:$0xff] }
  0x44   : > { %1637 = vmatprep.subr.mxu1 %v1372_v60  ;;  %1660 = vmatprep.subr.mxu0 %v1390_v10 }
  0x45   : > { %1638 = vmatpush3.msra.mxu1 %v1372_v60  ;;  %1661 = vmatpush3.msra.mxu0 %v1390_v10  ;;  %v1404_v10 = vld [vmem:[%s2178_s6 + $0x138] sm:$0xff] }
  0x46   : > { %1639 = vmatprep.subr.mxu1 %v1371_v61  ;;  %1662 = vmatprep.subr.mxu0 %v1389_v12 }
  0x47   : > { %1640 = vmatpush3.msra.mxu1 %v1371_v61  ;;  %1663 = vmatpush3.msra.mxu0 %v1389_v12  ;;  %v1402_v12 = vld [vmem:[%s2178_s6 + $0x128] sm:$0xff] }
  0x48   : > { %1641 = vmatprep.subr.mxu1 %v1370_v62  ;;  %1664 = vmatprep.subr.mxu0 %v1388_v14 }
  0x49   : > { %1642 = vmatpush3.msra.mxu1 %v1370_v62  ;;  %1665 = vmatpush3.msra.mxu0 %v1388_v14  ;;  %v1400_v14 = vld [vmem:[%s2178_s6 + $0x118] sm:$0xff] }
  0x4a   : > { %1643 = vmatprep.subr.mxu1 %v1369_v63  ;;  %1666 = vmatprep.subr.mxu0 %v1387_v16 }
  0x4b   : > { %1644 = vmatpush3.msra.mxu1 %v1369_v63  ;;  %1667 = vmatpush3.msra.mxu0 %v1387_v16  ;;  %v1398_v16 = vld [vmem:[%s2178_s6 + $0x108] sm:$0xff] }
  0x4c   : > { %1646 = vmatmul.mubr.msk.f32.vlgmr.msra.gmra.mxu1 %vm353_vm0, %v834_v0  ;;  %1683 = vmatprep.subr.mxu1 %v969_v6  ;;  %v1411_v0 = vld [vmem:[%s2178_s6 + $0x170] sm:$0xff] }
  0x4d   : > { %1684 = vmatpush3.msra.mxu1 %v969_v6  ;;  %1668 = vmatprep.subr.mxu0 %v1386_v17 }
  0x4e   : > { %1685 = vmatprep.subr.mxu1 %v968_v8  ;;  %1669 = vmatpush3.msra.mxu0 %v1386_v17  ;;  %v1397_v17 = vld [vmem:[%s2178_s6 + $0x100] sm:$0xff] }
  0x4f   : > { %1686 = vmatpush3.msra.mxu1 %v968_v8  ;;  %1670 = vmatprep.subr.mxu0 %v1385_v19  ;;  %v1406_v8 = vld [vmem:[%s2178_s6 + $0x148] sm:$0xff] }
  0x50   : > { %1687 = vmatprep.subr.mxu1 %v967_v9  ;;  %1671 = vmatpush3.msra.mxu0 %v1385_v19 }
  0x51   : > { %1688 = vmatpush3.msra.mxu1 %v967_v9  ;;  %1672 = vmatprep.subr.mxu0 %v1384_v21  ;;  %v1405_v9 = vld [vmem:[%s2178_s6 + $0x140] sm:$0xff] }
  0x52   : > { %1689 = vmatprep.subr.mxu1 %v966_v11  ;;  %1673 = vmatpush3.msra.mxu0 %v1384_v21 }
  0x53   : > { %1690 = vmatpush3.msra.mxu1 %v966_v11  ;;  %1674 = vmatprep.subr.mxu0 %v1383_v23  ;;  %v1403_v11 = vld [vmem:[%s2178_s6 + $0x130] sm:$0xff] }
  0x54   : > { %1691 = vmatprep.subr.mxu1 %v965_v13  ;;  %1675 = vmatpush3.msra.mxu0 %v1383_v23 }
  0x55   : > { %1692 = vmatpush3.msra.mxu1 %v965_v13  ;;  %1676 = vmatprep.subr.mxu0 %v1382_v25  ;;  %v1401_v13 = vld [vmem:[%s2178_s6 + $0x120] sm:$0xff] }
  0x56   : > { %1693 = vmatprep.subr.mxu1 %v964_v15  ;;  %1677 = vmatpush3.msra.mxu0 %v1382_v25  ;;  %v1413_v25 = vld [vmem:[%s2179_s7] ss:$0 sm:$0xff] }
  0x57   : > { %1694 = vmatpush3.msra.mxu1 %v964_v15  ;;  %1678 = vmatprep.subr.mxu0 %v1381_v27  ;;  %v1399_v15 = vld [vmem:[%s2178_s6 + $0x110] sm:$0xff] }
  0x58   : > { %1695 = vmatprep.subr.mxu1 %v963_v18  ;;  %1679 = vmatpush3.msra.mxu0 %v1381_v27 }
  0x59   : > { %1696 = vmatpush3.msra.mxu1 %v963_v18  ;;  %1718 = vmatprep.subr.mxu0 %v1412_v29 }
  0x5a   : > { %1697 = vmatprep.subr.mxu1 %v962_v20 }
  0x5b   : > { %1698 = vmatpush3.msra.mxu1 %v962_v20 }
  0x5c   : > { %1699 = vmatprep.subr.mxu1 %v961_v22 }
  0x5d   : > { %1700 = vmatpush3.msra.mxu1 %v961_v22 }
  0x5e   : > { %1701 = vmatprep.subr.mxu1 %v960_v24 }
  0x5f   : > { %1702 = vmatpush3.msra.mxu1 %v960_v24 }
  0x60   : > { %1703 = vmatprep.subr.mxu1 %v959_v26 }
  0x61   : > { %1704 = vmatpush3.msra.mxu1 %v959_v26 }
  0x62   : > { %1705 = vmatprep.subr.mxu1 %v958_v28 }
  0x63   : > { %1706 = vmatpush3.msra.mxu1 %v958_v28  ;;  %v1414_v28 = vld [vmem:[%s2180_s8] ss:$0 sm:$0xff] }
  0x64   : > { %1707 = vmatprep.subr.mxu1 %v957_v30 }
  0x65   : > { %1708 = vmatpush3.msra.mxu1 %v957_v30 }
  0x66   : > { %1709 = vmatprep.subr.mxu1 %v956_v31 }
  0x67   : > { %1710 = vmatpush3.msra.mxu1 %v956_v31 }
  0x68   : > { %1711 = vmatprep.subr.mxu1 %v955_v32 }
  0x69   : > { %1712 = vmatpush3.msra.mxu1 %v955_v32 }
  0x6a   : > { %1713 = vmatprep.subr.mxu1 %v954_v33 }
  0x6b   : > { %1714 = vmatpush3.msra.mxu1 %v954_v33 }
  0xdc   : > { %v1552_v34 = vpop.f32.mrf.mxu1 }
  0xde   : > { %v461_v35 = vpop.f32.mrf.mxu1 }
  0xe1   : > { %v1590_v38 = vpop.f32.mrf.mxu0 }
  0xe3   : > { %v634_v42 = vpop.f32.mrf.mxu0 }
  0xec   : > { %v1571_v36 = vpop.f32.mrf.mxu1 }
  0xed   : > { %v548_v39 = vadd.f32 %v1571_v36, %v1552_v34 }
  0xee   : > { %v542_v37 = vpop.f32.mrf.mxu1 }
  0xef   : > { %v543_v41 = vadd.f32 %v542_v37, %v461_v35  ;;  %v644_v43 = vadd.f32 %v1590_v38, %v548_v39 }
  0xf1   : > { %v643_v46 = vadd.f32 %v634_v42, %v543_v41 }
  0xf5   : > { %v1628_v45 = vpop.f32.mrf.mxu0 }
  0xf7   : > { %v822_v49 = vpop.f32.mrf.mxu0 }
  0xfc   : > { %v1609_v40 = vpop.f32.mrf.mxu1 }
  0xfd   : > { %v738_v47 = vadd.f32 %v1609_v40, %v644_v43 }
  0xfe   : > { %v728_v44 = vpop.f32.mrf.mxu1 }
  0xff   : > { %v737_v48 = vadd.f32 %v728_v44, %v643_v46  ;;  %v832_v50 = vadd.f32 %v1628_v45, %v738_v47 }
 0x101   : > { %v831_v53 = vadd.f32 %v822_v49, %v737_v48 }
 0x10c   : > { %v1647_v51 = vpop.f32.mrf.mxu1 }
 0x10d   : > { %v926_v54 = vadd.f32 %v1647_v51, %v832_v50 }
 0x10e   : > { %v916_v56 = vpop.f32.mrf.mxu1 }
 0x10f   : > { %v935_v57 = vmul.f32 %v1379_v52, %v926_v54  ;;  %v925_v58 = vadd.f32 %v916_v56, %v831_v53 }
 0x111   : > { %v944_v59 = vadd.f32 %v1380_v55, %v935_v57  ;;  %v934_v60 = vmul.f32 %v1379_v52, %v925_v58 }
 0x113   : > { %v946_v61 = vmax.f32 %v944_v59, 0.0  ;;  %v943_v62 = vadd.f32 %v1380_v55, %v934_v60 }
 0x115   : > { %951 = vst [vmem:[#allocation4 + $0x9] sm:$0xff] %v946_v61  ;;  %v945_v63 = vmax.f32 %v943_v62, 0.0 }
 0x117   : > { %950 = vst [vmem:[#allocation4 + $0x1] sm:$0xff] %v945_v63  ;;  %1680 = vmatprep.mubr.f32.mxu0 %v945_v63 }
 0x118   : > { %1681 = vmatmul.mubr.f32.vlgmr.msra.gmra.mxu0 %v946_v61 }
 0x119   : > { %1719 = vmatpush3.msra.mxu0 %v1412_v29 }
 0x11a   : > { %1720 = vmatprep.subr.mxu0 %v1411_v0 }
 0x11b   : > { %1721 = vmatpush3.msra.mxu0 %v1411_v0 }
 0x11c   : > { %1722 = vmatprep.subr.mxu0 %v1410_v1  ;;  %v1140_v18 = vld [vmem:[#allocation4 + $0xa] sm:$0xff] }
 0x11d   : > { %1723 = vmatpush3.msra.mxu0 %v1410_v1 }
 0x11e   : > { %v952_v4 = vld [vmem:[#allocation4] sm:$0xff]  ;;  %v953_v5 = vld [vmem:[#allocation4 + $0x8] sm:$0xff]  ;;  %1724 = vmatprep.subr.mxu0 %v1409_v2 }
 0x11f   : > { %v1139_v6 = vld [vmem:[#allocation4 + $0x2] sm:$0xff]  ;;  %1715 = vmatprep.mubr.f32.mxu1 %v952_v4  ;;  %1725 = vmatpush3.msra.mxu0 %v1409_v2 }
 0x120   : > { %1750 = vmatprep.mubr.f32.mxu0 %v1139_v6  ;;  %1716 = vmatmul.mubr.f32.vlgmr.msra.gmra.mxu1 %v953_v5 }
 0x121   : > { %1726 = vmatprep.subr.mxu0 %v1408_v3 }
 0x122   : > { %1727 = vmatpush3.msra.mxu0 %v1408_v3 }
 0x123   : > { %1728 = vmatprep.subr.mxu0 %v1407_v7 }
 0x124   : > { %1729 = vmatpush3.msra.mxu0 %v1407_v7 }
 0x125   : > { %1730 = vmatprep.subr.mxu0 %v1406_v8 }
 0x126   : > { %1731 = vmatpush3.msra.mxu0 %v1406_v8 }
 0x127   : > { %1732 = vmatprep.subr.mxu0 %v1405_v9 }
 0x128   : > { %1733 = vmatpush3.msra.mxu0 %v1405_v9 }
 0x129   : > { %1734 = vmatprep.subr.mxu0 %v1404_v10 }
 0x12a   : > { %1735 = vmatpush3.msra.mxu0 %v1404_v10 }
 0x12b   : > { %1736 = vmatprep.subr.mxu0 %v1403_v11 }
 0x12c   : > { %1737 = vmatpush3.msra.mxu0 %v1403_v11 }
 0x12d   : > { %1738 = vmatprep.subr.mxu0 %v1402_v12 }
 0x12e   : > { %1739 = vmatpush3.msra.mxu0 %v1402_v12 }
 0x12f   : > { %1740 = vmatprep.subr.mxu0 %v1401_v13 }
 0x130   : > { %1741 = vmatpush3.msra.mxu0 %v1401_v13 }
 0x131   : > { %1742 = vmatprep.subr.mxu0 %v1400_v14 }
 0x132   : > { %1743 = vmatpush3.msra.mxu0 %v1400_v14 }
 0x133   : > { %1744 = vmatprep.subr.mxu0 %v1399_v15 }
 0x134   : > { %1745 = vmatpush3.msra.mxu0 %v1399_v15 }
 0x135   : > { %1746 = vmatprep.subr.mxu0 %v1398_v16 }
 0x136   : > { %1747 = vmatpush3.msra.mxu0 %v1398_v16 }
 0x137   : > { %1748 = vmatprep.subr.mxu0 %v1397_v17 }
 0x138   : > { %1749 = vmatpush3.msra.mxu0 %v1397_v17 }
 0x139   : > { %1751 = vmatmul.mubr.f32.vlgmr.msra.gmra.mxu0 %v1140_v18 }
 0x1d8   : > { %v1682_v19 = vpop.f32.mrf.mxu0 }
 0x1da   : > { %v1055_v21 = vpop.f32.mrf.mxu0 }
 0x1e0   : > { %v1717_v20 = vpop.f32.mrf.mxu1 }
 0x1e1   : > { %v1136_v23 = vadd.f32 %v1717_v20, %v1682_v19 }
 0x1e2   : > { %v1130_v22 = vpop.f32.mrf.mxu1 }
 0x1e3   : > { %v1131_v26 = vadd.f32 %v1130_v22, %v1055_v21 }
 0x1f9   : > { %v1752_v24 = vpop.f32.mrf.mxu0 }
 0x1fa   : > { %v1234_v27 = vadd.f32 %v1752_v24, %v1136_v23 }
 0x1fb   : > { %v1224_v29 = vpop.f32.mrf.mxu0 }
 0x1fc   : > { %v1243_v30 = vmul.f32 %v1413_v25, %v1234_v27  ;;  %v1233_v31 = vadd.f32 %v1224_v29, %v1131_v26 }
 0x1fe   : > { %v1252_v32 = vadd.f32 %v1414_v28, %v1243_v30  ;;  %v1242_v33 = vmul.f32 %v1413_v25, %v1233_v31 }
 0x200   : > { %v1254_v34 = vmax.f32 %v1252_v32, 0.0  ;;  %v1251_v35 = vadd.f32 %v1414_v28, %v1242_v33 }
 0x202   : > { %1256 = vst [vmem:[%s352_s10 + $0x8] sm:$0xff] %v1254_v34  ;;  %v1253_v36 = vmax.f32 %v1251_v35, 0.0 }
 0x204   : > { %1255 = vst [vmem:[%s352_s10] sm:$0xff] %v1253_v36 }
 0x205 PF: > { %s19_s30 = sadd.s32 1, %s1768_s30  }
 0x206   : > { %p16_p4 = scmp.ge.s32.totalorder %s19_s30, 4  }
 0x208   :  { %18 = sbr.rel (!%p16_p4) target bundleno = 1 (0x1), region = 95 }

</bundles_post_ra>
